<compile_context>
chip_gen: v6e
topology: v6e:2x2x1
jax: 0.10.0
libtpu: 0.0.40
codegen_flags: <defaults>
</compile_context>

<pallas_src>
import jax
import jax.numpy as jnp
from jax.experimental import pallas as pl
from jax.experimental.pallas import tpu as pltpu

LANE = 128     # vreg lane width  (last dim)
SUBLANE = 8    # f32 sublane width (second-to-last dim)


def _round_up(x, m):
    return ((x + m - 1) // m) * m


def _pad2d(a, rows, cols):
    r, c = a.shape
    return jnp.pad(a, ((0, rows - r), (0, cols - c)))


def lin_mlp_kernel(x_ref, w1_ref, b1_ref, w2_ref, b2_ref, o_ref):
    # hidden = sigmoid(x @ W1 + b1)   -- MXU matmul, EUP sigmoid
    h = jnp.dot(x_ref[...], w1_ref[...], preferred_element_type=jnp.float32)
    h = jax.nn.sigmoid(h + b1_ref[...])          # (1, Hp) broadcasts over rows
    # out = hidden @ W2 + b2
    y = jnp.dot(h, w2_ref[...], preferred_element_type=jnp.float32)
    o_ref[...] = (y + b2_ref[...]).astype(o_ref.dtype)


def prepare_lin_params(w1, b1, w2, b2):
    """Pre-pad static params ONCE (hoisted out of the per-call path).

    w1: (src, hidden), b1: (1, hidden), w2: (hidden, tgt), b2: (1, tgt)
    Returns (w1_p, b1_p, w2_p, b2_p, tgt) with hidden/target padded to 128.
    Zero padding is mathematically inert (see module docstring).
    """
    src, hidden = w1.shape
    tgt = w2.shape[1]
    assert b1.shape == (1, hidden)
    assert w2.shape[0] == hidden
    assert b2.shape == (1, tgt)

    hid_p = _round_up(hidden, LANE)
    tgt_p = _round_up(tgt, LANE)

    w1_p = _pad2d(w1, src, hid_p)          # src left un-padded (K=src matmul)
    b1_p = _pad2d(b1, 1, hid_p)
    w2_p = _pad2d(w2, hid_p, tgt_p)
    b2_p = _pad2d(b2, 1, tgt_p)
    return w1_p, b1_p, w2_p, b2_p, tgt


def lin_forward(x, params, *, tm=512):
    """Pallas TPU implementation of LIN.forward.

    x      : (N, SOURCE_SIZE) float32
    params : output of prepare_lin_params (pre-padded weights/biases)
    returns (N, TARGET_SIZE) float32
    """
    w1_p, b1_p, w2_p, b2_p, tgt = params
    n, src = x.shape
    assert w1_p.shape[0] == src
    hid_p = w1_p.shape[1]
    tgt_p = w2_p.shape[1]

    vmem_spec = pl.BlockSpec(memory_space=pltpu.MemorySpace.VMEM)

    if n < 2 * tm:
        # ---- small-batch path: grid-less, full-array VMEM blocks, no pads ----
        out_p = pl.pallas_call(
            lin_mlp_kernel,
            out_shape=jax.ShapeDtypeStruct((n, tgt_p), x.dtype),
            in_specs=[vmem_spec] * 5,
            out_specs=vmem_spec,
        )(x, w1_p, b1_p, w2_p, b2_p)
        return out_p[:, :tgt]

    # ---- large-batch path: batch-tiled "parallel" grid ----
    n_p = _round_up(n, tm)
    x_p = _pad2d(x, n_p, src) if n_p != n else x
    grid = (n_p // tm,)

    out_p = pl.pallas_call(
        lin_mlp_kernel,
        out_shape=jax.ShapeDtypeStruct((n_p, tgt_p), x.dtype),
        grid=grid,
        in_specs=[
            pl.BlockSpec((tm, src), lambda i: (i, 0)),        # x row tile
            pl.BlockSpec((src, hid_p), lambda i: (0, 0)),     # W1 (grid-invariant)
            pl.BlockSpec((1, hid_p), lambda i: (0, 0)),       # b1
            pl.BlockSpec((hid_p, tgt_p), lambda i: (0, 0)),   # W2
            pl.BlockSpec((1, tgt_p), lambda i: (0, 0)),       # b2
        ],
        out_specs=pl.BlockSpec((tm, tgt_p), lambda i: (i, 0)),
        compiler_params=pltpu.CompilerParams(
            dimension_semantics=("parallel",)),
    )(x_p, w1_p, b1_p, w2_p, b2_p)

    return out_p[:n, :tgt]


def init_lin_params(key, source_size, hidden, target_size, dtype=jnp.float32):
    """Deterministic init mimicking torch.nn.Linear default (uniform +/- 1/sqrt(fan_in))."""
    k1, k2, k3, k4 = jax.random.split(key, 4)
    bound1 = 1.0 / jnp.sqrt(source_size)
    bound2 = 1.0 / jnp.sqrt(hidden)
    # Stored as (in, out) so the kernel does x @ W (torch stores (out, in), does x @ W.T).
    w1 = jax.random.uniform(k1, (source_size, hidden), dtype, -bound1, bound1)
    b1 = jax.random.uniform(k2, (1, hidden), dtype, -bound1, bound1)
    w2 = jax.random.uniform(k3, (hidden, target_size), dtype, -bound2, bound2)
    b2 = jax.random.uniform(k4, (1, target_size), dtype, -bound2, bound2)
    return w1, b1, w2, b2


def lin_reference(x, w1, b1, w2, b2):
    h = jax.nn.sigmoid(x @ w1 + b1)
    return h @ w2 + b2


if __name__ == "__main__":
    SOURCE_SIZE = 32
    TARGET_SIZE = 16
    HIDDEN = 20          # module default
    BATCH = 8

    key = jax.random.PRNGKey(0)
    kx, kp, kx2 = jax.random.split(key, 3)
    x = jax.random.normal(kx, (BATCH, SOURCE_SIZE), jnp.float32)
    w1, b1, w2, b2 = init_lin_params(kp, SOURCE_SIZE, HIDDEN, TARGET_SIZE)

    # Static padding happens once here, not per forward call.
    params = prepare_lin_params(w1, b1, w2, b2)

    # --- small-batch (grid-less) path ---
    out = lin_forward(x, params)
    out = jax.block_until_ready(out)
    ref = lin_reference(x, w1, b1, w2, b2)
    assert out.shape == (BATCH, TARGET_SIZE)
    assert jnp.allclose(out, ref, atol=1e-5, rtol=1e-5)

    # --- large-batch (batch-tiled "parallel" grid) path ---
    N_BIG = 1536         # non-multiple of tm=512 to exercise the row pad
    x_big = jax.random.normal(kx2, (N_BIG, SOURCE_SIZE), jnp.float32)
    out_big = lin_forward(x_big, params, tm=512)
    out_big = jax.block_until_ready(out_big)
    ref_big = lin_reference(x_big, w1, b1, w2, b2)
    assert out_big.shape == (N_BIG, TARGET_SIZE)
    assert jnp.allclose(out_big, ref_big, atol=1e-5, rtol=1e-5)

    print("KERNEL_OK")
</pallas_src>

<mosaic_0001>
module attributes {stable_mosaic.version = 11 : i64} {
  func.func @lin_mlp_kernel(%arg0: memref<8x32xf32, #tpu.memory_space<vmem>>, %arg1: memref<32x128xf32, #tpu.memory_space<vmem>>, %arg2: memref<1x128xf32, #tpu.memory_space<vmem>>, %arg3: memref<128x128xf32, #tpu.memory_space<vmem>>, %arg4: memref<1x128xf32, #tpu.memory_space<vmem>>, %arg5: memref<8x128xf32, #tpu.memory_space<vmem>>) attributes {dimension_semantics = [], scalar_prefetch = 0 : i64, scratch_operands = 0 : i64, tpu.core_type = #tpu.core_type<tc>} {
    %c0 = arith.constant 0 : index
    %c0_0 = arith.constant 0 : index
    %0 = vector.load %arg0[%c0, %c0_0] : memref<8x32xf32, #tpu.memory_space<vmem>>, vector<8x32xf32>
    %c0_1 = arith.constant 0 : index
    %c0_2 = arith.constant 0 : index
    %1 = vector.load %arg1[%c0_1, %c0_2] : memref<32x128xf32, #tpu.memory_space<vmem>>, vector<32x128xf32>
    %cst = arith.constant dense<0.000000e+00> : vector<8x128xf32>
    %2 = tpu.matmul %0, %1, %cst {dimension_numbers = #tpu.dot_dimension_numbers<[1], [0], [0], [1], [0, 0, 1, 1], [], []>} : vector<8x32xf32>, vector<32x128xf32>, vector<8x128xf32> -> vector<8x128xf32>
    %c0_3 = arith.constant 0 : index
    %c0_4 = arith.constant 0 : index
    %3 = vector.load %arg2[%c0_3, %c0_4] : memref<1x128xf32, #tpu.memory_space<vmem>>, vector<1x128xf32>
    %4 = vector.broadcast %3 : vector<1x128xf32> to vector<8x128xf32>
    %5 = arith.addf %2, %4 : vector<8x128xf32>
    %6 = arith.negf %5 : vector<8x128xf32>
    %7 = math.exp %6 : vector<8x128xf32>
    %cst_5 = arith.constant 1.000000e+00 : f32
    %8 = vector.broadcast %cst_5 : f32 to vector<8x128xf32>
    %9 = arith.addf %8, %7 : vector<8x128xf32>
    %10 = arith.divf %8, %9 : vector<8x128xf32>
    %c0_6 = arith.constant 0 : index
    %c0_7 = arith.constant 0 : index
    %11 = vector.load %arg3[%c0_6, %c0_7] : memref<128x128xf32, #tpu.memory_space<vmem>>, vector<128x128xf32>
    %cst_8 = arith.constant dense<0.000000e+00> : vector<8x128xf32>
    %12 = tpu.matmul %10, %11, %cst_8 {dimension_numbers = #tpu.dot_dimension_numbers<[1], [0], [0], [1], [0, 0, 1, 1], [], []>} : vector<8x128xf32>, vector<128x128xf32>, vector<8x128xf32> -> vector<8x128xf32>
    %c0_9 = arith.constant 0 : index
    %c0_10 = arith.constant 0 : index
    %13 = vector.load %arg4[%c0_9, %c0_10] : memref<1x128xf32, #tpu.memory_space<vmem>>, vector<1x128xf32>
    %14 = vector.broadcast %13 : vector<1x128xf32> to vector<8x128xf32>
    %15 = arith.addf %12, %14 : vector<8x128xf32>
    %c0_11 = arith.constant 0 : index
    %c0_12 = arith.constant 0 : index
    %16 = vector.load %arg5[%c0_11, %c0_12] : memref<8x128xf32, #tpu.memory_space<vmem>>, vector<8x128xf32>
    tpu.vector_store %arg5[%c0_11, %c0_12], %15 {strides = array<i32>} : memref<8x128xf32, #tpu.memory_space<vmem>>, vector<8x128xf32>,
    return
  }
}

</mosaic_0001>

<bundles_post_ra>
// kernel: tpu_custom_call.1
= control target key start
LH: loop header
LB: loop body
LE: loop exit
PB: predicated region body
PF: predicated region fallthrough
CT: control target
= control target key end

     0   :  { %10 = vsyncpa [#allocation3], 0  ;;  %s510_s0 = inlined_call_operand.hbm [shape: f32[8,32], index: 0, kind: input, shape index: {}]   ;;  %s511_s1 = inlined_call_operand.hbm [shape: f32[32,128], index: 1, kind: input, shape index: {}]   ;;  %s512_s2 = inlined_call_operand.vmem [shape: f32[1,128], index: 2, kind: input, shape index: {}]   ;;  %s513_s3 = inlined_call_operand.hbm [shape: f32[128,128], index: 3, kind: input, shape index: {}]   ;;  %s514_s4 = inlined_call_operand.vmem [shape: f32[1,128], index: 4, kind: input, shape index: {}]   ;;  %s515_s5 = inlined_call_operand.hbm [shape: f32[8,128], index: 5, kind: output, shape index: {}]  }
   0x1   :  { %11 = vsyncpa [#allocation6], 0 }
   0x2   :  { %12 = vsyncpa [#allocation4], 0  ;;  %s432_s18 = smov [#allocation5]  }
   0x3   :  { %s28_s19 = sshll.u32 %s432_s18, 4  ;;  %s29_s19 = int_to_ptr.vmem [resolvable:$true] %s28_s19 }
   0x4   :  { %s354_s20 = scalar_lea.vmem %s29_s19, 512  ;;  %p359_p1 = scmp.lt.s32.totalorder %s29_s19, %s29_s19 }
   0x5   :  { %p355_p0 = scmp.ne.s32.totalorder %s29_s19, %s354_s20  ;;  %p360_p2 = scmp.lt.s32.totalorder %s354_s20, %s354_s20 }
   0x7   :  { %p361_p3 = por %p360_p2, %p359_p1 }
   0x9   :  { %p362_p4 = pnand %p361_p3, %p355_p0 }
   0xb   :  { %365 = shalt.err (!%p362_p4)
}
   0xc   :  { %s433_s21 = smov 128   ;;  %s434_s22 = smov 8  }
   0xd   :  { %34 = dma.hbm_to_vmem [thread:$0]  %s511_s1, 512, %s29_s19, [#allocation6], %s433_s21, %s433_s21, %s434_s22  }
   0xe   :  { %s435_s25 = smov [#allocation2]   ;;  %s436_s27 = smov [#allocation7]  }
   0xf   :  { %s19_s26 = sshll.u32 %s435_s25, 4  ;;  %s42_s28 = sshll.u32 %s436_s27, 4  ;;  %s20_s26 = int_to_ptr.vmem [resolvable:$true] %s19_s26  ;;  %s43_s28 = int_to_ptr.vmem [resolvable:$true] %s42_s28 }
  0x10   :  { %s374_s29 = scalar_lea.vmem %s20_s26, 128  ;;  %p379_p6 = scmp.lt.s32.totalorder %s20_s26, %s20_s26 }
  0x11   :  { %p375_p5 = scmp.ne.s32.totalorder %s20_s26, %s374_s29  ;;  %p380_p7 = scmp.lt.s32.totalorder %s374_s29, %s374_s29 }
  0x13   :  { %p381_p8 = por %p380_p7, %p379_p6 }
  0x15   :  { %p382_p9 = pnand %p381_p8, %p375_p5 }
  0x17   :  { %385 = shalt.err (!%p382_p9)
}
  0x18   :  { %22 = dma.hbm_to_vmem [thread:$0]  %s510_s0, 128, %s20_s26, [#allocation3]  }
  0x19   :  { %s394_s7 = scalar_lea.vmem %s43_s28, 2048  ;;  %p399_p11 = scmp.lt.s32.totalorder %s43_s28, %s43_s28 }
  0x1a   :  { %p395_p10 = scmp.ne.s32.totalorder %s43_s28, %s394_s7  ;;  %p400_p12 = scmp.lt.s32.totalorder %s394_s7, %s394_s7 }
  0x1c   :  { %p401_p13 = por %p400_p12, %p399_p11 }
  0x1e   :  { %p402_p0 = pnand %p401_p13, %p395_p10 }
  0x20   :  { %405 = shalt.err (!%p402_p0)
}
  0x21   :  { %48 = dma.hbm_to_vmem [thread:$0]  %s513_s3, 2048, %s43_s28, [#allocation6], %s433_s21, %s433_s21, %s434_s22  }
  0x22   :  { %426 = dma.done.wait [#allocation3], 128  }
  0x23   :  { %427 = vsyncadd [#allocation3], 4294967168 }
  0x24   :  { %428 = dma.done.wait [#allocation6], 2560  }
  0x25   :  { %429 = vsyncadd [#allocation6], 4294964736  ;;  %v437_v0 = vmov 0.0   ;;  %vm438_vm0 = vmmov 0   ;;  %v64_v1 = vld [vmem:[#allocation5 + $0x18] sm:$0xff]  ;;  %v63_v2 = vld [vmem:[#allocation5 + $0x10] sm:$0xff] }
  0x26   :  { %288 = vmatprep.subr.mxu0 %v437_v0  ;;  %296 = vmatprep.mubr.msk.f32.mxu0 %vm438_vm0, %v437_v0  ;;  %v62_v3 = vld [vmem:[#allocation5 + $0x8] sm:$0xff]  ;;  %v61_v4 = vld [vmem:[#allocation5] sm:$0xff]  ;;  %v60_v5 = vld [vmem:[#allocation2] sm:$0xff]  ;;  %vm72_vm1 = vcmask 261120   ;;  %s439_s11 = smov [#allocation8]  }
  0x27   :  { %299 = vmatprep.subr.mxu1 %v437_v0  ;;  %331 = vmatprep.mubr.msk.f32.mxu1 %vm438_vm0, %v437_v0  ;;  %v167_v6 = vld [vmem:[#allocation7 + $0x78] sm:$0xff]  ;;  %v166_v7 = vld [vmem:[#allocation7 + $0x70] sm:$0xff]  ;;  %v165_v8 = vld [vmem:[#allocation7 + $0x68] sm:$0xff]  ;;  %s252_s12 = sshll.u32 %s439_s11, 4  ;;  %s253_s12 = int_to_ptr.vmem [resolvable:$true] %s252_s12 }
  0x28   :  { %289 = vmatpush3.msra.mxu0 %v64_v1  ;;  %300 = vmatpush3.msra.mxu1 %v167_v6  ;;  %v164_v9 = vld [vmem:[#allocation7 + $0x60] sm:$0xff]  ;;  %v163_v10 = vld [vmem:[#allocation7 + $0x58] sm:$0xff]  ;;  %v162_v11 = vld [vmem:[#allocation7 + $0x50] sm:$0xff]  ;;  %p411_p2 = scmp.lt.s32.totalorder %s253_s12, %s253_s12 }
  0x29   :  { %290 = vmatprep.subr.mxu0 %v437_v0  ;;  %301 = vmatprep.subr.mxu1 %v437_v0  ;;  %v161_v12 = vld [vmem:[#allocation7 + $0x48] sm:$0xff]  ;;  %v160_v13 = vld [vmem:[#allocation7 + $0x40] sm:$0xff]  ;;  %v159_v14 = vld [vmem:[#allocation7 + $0x38] sm:$0xff] }
  0x2a   :  { %291 = vmatpush3.msra.mxu0 %v63_v2  ;;  %302 = vmatpush3.msra.mxu1 %v166_v7  ;;  %v158_v15 = vld [vmem:[#allocation7 + $0x30] sm:$0xff]  ;;  %v157_v16 = vld [vmem:[#allocation7 + $0x28] sm:$0xff]  ;;  %v156_v17 = vld [vmem:[#allocation7 + $0x20] sm:$0xff] }
  0x2b   :  { %292 = vmatprep.subr.mxu0 %v437_v0  ;;  %303 = vmatprep.subr.mxu1 %v437_v0  ;;  %v155_v18 = vld [vmem:[#allocation7 + $0x18] sm:$0xff]  ;;  %v154_v19 = vld [vmem:[#allocation7 + $0x10] sm:$0xff]  ;;  %v153_v20 = vld [vmem:[#allocation7 + $0x8] sm:$0xff] }
  0x2c   :  { %293 = vmatpush3.msra.mxu0 %v62_v3  ;;  %304 = vmatpush3.msra.mxu1 %v165_v8  ;;  %v152_v21 = vld [vmem:[#allocation7] sm:$0xff]  ;;  %v262_v22 = vld [vmem:[%s512_s2] ss:$0 sm:$0xff]  ;;  %s406_s2 = scalar_lea.vmem %s253_s12, 128 }
  0x2d   :  { %294 = vmatprep.subr.mxu0 %v437_v0  ;;  %305 = vmatprep.subr.mxu1 %v437_v0  ;;  %v265_v30 = vld [vmem:[%s514_s4] ss:$0 sm:$0xff]  ;;  %p407_p1 = scmp.ne.s32.totalorder %s253_s12, %s406_s2  ;;  %p412_p3 = scmp.lt.s32.totalorder %s406_s2, %s406_s2 }
  0x2e   :  { %295 = vmatpush3.msra.mxu0 %v61_v4  ;;  %306 = vmatpush3.msra.mxu1 %v164_v9 }
  0x2f   :  { %297 = vmatmul.mubr.msk.f32.vlgmr.msra.gmra.mxu0 %vm72_vm1, %v60_v5  ;;  %307 = vmatprep.subr.mxu1 %v437_v0  ;;  %p413_p4 = por %p412_p3, %p411_p2 }
  0x30   :  { %308 = vmatpush3.msra.mxu1 %v163_v10 }
  0x31   :  { %309 = vmatprep.subr.mxu1 %v437_v0  ;;  %p414_p5 = pnand %p413_p4, %p407_p1 }
  0x32   :  { %310 = vmatpush3.msra.mxu1 %v162_v11 }
  0x33   :  { %311 = vmatprep.subr.mxu1 %v437_v0 }
  0x34   :  { %312 = vmatpush3.msra.mxu1 %v161_v12 }
  0x35   :  { %313 = vmatprep.subr.mxu1 %v437_v0 }
  0x36   :  { %314 = vmatpush3.msra.mxu1 %v160_v13 }
  0x37   :  { %315 = vmatprep.subr.mxu1 %v437_v0 }
  0x38   :  { %316 = vmatpush3.msra.mxu1 %v159_v14 }
  0x39   :  { %317 = vmatprep.subr.mxu1 %v437_v0 }
  0x3a   :  { %318 = vmatpush3.msra.mxu1 %v158_v15 }
  0x3b   :  { %319 = vmatprep.subr.mxu1 %v437_v0 }
  0x3c   :  { %320 = vmatpush3.msra.mxu1 %v157_v16 }
  0x3d   :  { %321 = vmatprep.subr.mxu1 %v437_v0 }
  0x3e   :  { %322 = vmatpush3.msra.mxu1 %v156_v17 }
  0x3f   :  { %323 = vmatprep.subr.mxu1 %v437_v0 }
  0x40   :  { %324 = vmatpush3.msra.mxu1 %v155_v18 }
  0x41   :  { %325 = vmatprep.subr.mxu1 %v437_v0 }
  0x42   :  { %326 = vmatpush3.msra.mxu1 %v154_v19 }
  0x43   :  { %327 = vmatprep.subr.mxu1 %v437_v0 }
  0x44   :  { %328 = vmatpush3.msra.mxu1 %v153_v20 }
  0x45   :  { %329 = vmatprep.subr.mxu1 %v437_v0 }
  0x46   :  { %330 = vmatpush3.msra.mxu1 %v152_v21 }
  0xef   :  { %v142_v23 = vpop.f32.mrf.mxu0 }
  0xf0   :  { %v143_v24 = vadd.f32 %v262_v22, %v142_v23 }
  0xf1   :  { %v298_v25 = vpop.f32.mrf.mxu0 }
  0xf2   :  { %v264_v26 = vmul.f32 -1.442695, %v143_v24 }
  0xf4   :  { %342 = vpow2.f32 %v264_v26 }
 0x101   :  { %v343_v27 = vpop.eup %342 }
 0x102   :  { %v149_v28 = vadd.f32 1.0, %v343_v27 }
 0x104   :  { %344 = vrcp.f32 %v149_v28 }
 0x111   :  { %v345_v29 = vpop.eup %344 }
 0x112   :  { %332 = vmatmul.mubr.f32.vlgmr.msra.gmra.mxu1 %v345_v29 }
 0x1d2   :  { %v241_v31 = vpop.f32.mrf.mxu1 }
 0x1d3   :  { %v242_v32 = vadd.f32 %v265_v30, %v241_v31 }
 0x1d4   :  { %v333_v33 = vpop.f32.mrf.mxu1 }
 0x1d5   :  { %245 = vst [vmem:[#allocation8] sm:$0xff] %v242_v32 }
 0x1d6   :  { %417 = shalt.err (!%p414_p5)
}
 0x1d7   :  { %255 = dma.vmem_to_hbm [thread:$0]  %s253_s12, 128, %s515_s5, [#allocation4]  }
 0x1d8   :  { %430 = dma.done.wait [#allocation4], 128  }
 0x1d9   :  { %431 = vsyncadd [#allocation4], 4294967168 }
 0x1da   :  { %259 = vsyncpa [#allocation3], 1 }
 0x1db   :  { %260 = vsyncpa [#allocation6], 1 }
 0x1dc   :  { %261 = vsyncpa [#allocation4], 1 }

</bundles_post_ra>
